<compile_context>
chip_gen: v7x
topology: tpu7x:2x2x1
jax: 0.10.0
libtpu: 0.0.40
codegen_flags: <defaults>
</compile_context>

<pallas_src>
import functools

import jax
import jax.numpy as jnp
from jax import lax
from jax.experimental import pallas as pl
from jax.experimental.pallas import tpu as pltpu

_LANE = 128
_SUBLANE = 8
_VREG = _LANE * _SUBLANE  # 1024 elements


def _round_up(v: int, m: int) -> int:
    return ((v + m - 1) // m) * m


def _chip_config():
    """(target_tile_bytes, num_tensorcores, vmem_cap_bytes) from device kind.

    Generation-aware defaults:
      * v7x : 2 TCs/chip, 64 MiB physical VMEM/TC, ~3.2 TB/s HBM -> 8 MiB tiles,
              shard the reduction across both cores, cap scoped VMEM at 48 MiB.
      * v5e : 16 MiB scoped-VMEM default and ~0.8 TB/s HBM -> 4 MiB tiles
              already amortize step overhead to ~7%.
      * v6e / v4 / v5p / unknown : 8 MiB tiles (v4/v5p are megacore: 2 TCs).
    """
    kind = ""
    try:
        kind = jax.devices()[0].device_kind.lower()
    except Exception:  # pragma: no cover
        pass
    if "v7" in kind or "7x" in kind:
        return 8 << 20, 2, 48 << 20
    if "v5 lite" in kind or "v5e" in kind or "v5litepod" in kind:
        return 4 << 20, 1, 100 << 20
    if "v4" in kind or "v5p" in kind or ("v5" in kind and "lite" not in kind):
        return 8 << 20, 2, 100 << 20
    return 8 << 20, 1, 100 << 20


def _sum_kernel(x_ref, o_ref, *, total_rows, block_rows, blocks_per_split, ragged):
    c = pl.program_id(0)  # "parallel": shards across TensorCores on v7x/megacore
    i = pl.program_id(1)  # "arbitrary": sequential reduction axis

    @pl.when(i == 0)
    def _init():
        # o_ref's block index is constant along the reduction axis, so it stays
        # VMEM-resident across i; accumulate straight into it (no scratch).
        o_ref[...] = jnp.zeros_like(o_ref)

    # Cast to f32 on load (VPU has slack; HBM traffic stays at input width).
    x = x_ref[...].astype(jnp.float32)  # (block_rows, 128)

    def _accumulate(vals):
        # Keep partials in full-vreg (8, 128) shape: per-step work is pure VPU
        # adds; the single 8->1 sublane (XLU) reduce is deferred to the wrapper.
        o_ref[...] += vals.reshape(block_rows // _SUBLANE, _SUBLANE, _LANE).sum(axis=0)

    if not ragged:
        _accumulate(x)
    else:
        rows_left = total_rows - (c * blocks_per_split + i) * block_rows

        @pl.when(rows_left >= block_rows)
        def _full_block():
            _accumulate(x)

        @pl.when(rows_left < block_rows)
        def _partial_block():
            row_ids = lax.broadcasted_iota(jnp.int32, (block_rows, _LANE), 0)
            _accumulate(jnp.where(row_ids < rows_left, x, 0.0))


def pallas_mean(x: jax.Array, *, block_rows=None, splits=None) -> jax.Array:
    """Scalar mean of `x` computed by a Pallas TPU reduction kernel."""
    n = x.size
    if n == 0:
        return jnp.float32(jnp.nan)

    flat = jnp.ravel(x)  # bitcast for contiguous inputs
    itemsize = jnp.dtype(x.dtype).itemsize

    # Only the 8x128-aligned prefix goes through the kernel; the <1024-element
    # tail is summed in the wrapper instead of materializing a padded copy of
    # the whole array in HBM.
    n_main = (n // _VREG) * _VREG
    tail = flat[n_main:]
    tail_sum = jnp.sum(tail.astype(jnp.float32)) if tail.size else jnp.float32(0.0)

    if n_main == 0:
        # Fewer than 1024 elements: a kernel launch is pure overhead.
        return tail_sum / jnp.float32(n)

    rows = n_main // _LANE  # multiple of 8
    slab = flat[:n_main].reshape(rows, _LANE)
    # TODO(synk): for ragged n the prefix slice still costs one HBM copy; a
    # manual-DMA (pl.ANY) path could stream the unaligned tail copy-free too.

    target_tile_bytes, n_cores, vmem_cap = _chip_config()
    splits = n_cores if splits is None else max(1, int(splits))

    if block_rows is None:
        # Tile size in BYTES is the tuning knob: big lane-dense tiles amortize
        # the ~0.35us per-grid-step pipeline overhead regardless of dtype.
        block_rows = (target_tile_bytes // (_LANE * itemsize)) // _SUBLANE * _SUBLANE
    block_rows = max(_SUBLANE, (int(block_rows) // _SUBLANE) * _SUBLANE)
    block_rows = min(block_rows, rows)

    num_blocks = pl.cdiv(rows, block_rows)
    if splits > 1:
        if num_blocks % splits != 0:
            # Re-pick block_rows so the natural block count divides evenly over
            # the TensorCores (never creates fully out-of-bounds blocks).
            nb = _round_up(num_blocks, splits)
            block_rows = _round_up(pl.cdiv(rows, nb), _SUBLANE)
            num_blocks = pl.cdiv(rows, block_rows)
        if num_blocks % splits != 0 or num_blocks < splits:
            splits = 1  # tiny inputs: just run on one core
    blocks_per_split = num_blocks // splits
    ragged = (rows % block_rows) != 0

    tile_bytes = block_rows * _LANE * itemsize
    vmem_limit = int(min(vmem_cap, max(16 << 20, 2 * tile_bytes + (8 << 20))))

    kernel = functools.partial(
        _sum_kernel,
        total_rows=rows,
        block_rows=block_rows,
        blocks_per_split=blocks_per_split,
        ragged=ragged,
    )
    out_bytes = splits * _SUBLANE * _LANE * 4

    partials = pl.pallas_call(
        kernel,
        out_shape=jax.ShapeDtypeStruct((splits, _SUBLANE, _LANE), jnp.float32),
        grid_spec=pltpu.PrefetchScalarGridSpec(
            num_scalar_prefetch=0,
            grid=(splits, blocks_per_split),
            in_specs=[
                pl.BlockSpec(
                    (block_rows, _LANE),
                    lambda c, i, _b=blocks_per_split: (c * _b + i, 0),
                )
            ],
            # Leading dim squeezed; block index constant along the reduction
            # axis -> VMEM-resident accumulator, written back once per split.
            out_specs=pl.BlockSpec((None, _SUBLANE, _LANE), lambda c, i: (c, 0, 0)),
        ),
        compiler_params=pltpu.CompilerParams(
            dimension_semantics=("parallel", "arbitrary"),
            vmem_limit_bytes=vmem_limit,
        ),
        cost_estimate=pl.CostEstimate(
            flops=int(n_main),
            transcendentals=0,
            bytes_accessed=int(n_main * itemsize + out_bytes),
        ),
    )(slab)

    # Single cross-sublane/lane reduce + normalization.  Plain f32 accumulation
    # may drift a few ULPs vs jnp.mean's pairwise reduce for n >~ 1e8; fine at
    # loss-scalar tolerances.
    return (jnp.sum(partials, dtype=jnp.float32) + tail_sum) / jnp.float32(n)


_pallas_mean = jax.jit(pallas_mean, static_argnames=("block_rows", "splits"))


class BasicLoss:
    """JAX/Pallas port of the abstract PyTorch BasicLoss base class."""

    def __init__(self, *args, **kwargs):
        # Reference __init__ defines no parameters.
        pass

    def forward(self, *args, **kwargs):
        # TODO(synk): reference forward is abstract (raises NotImplementedError);
        # concrete subclasses should build on `pallas_mean` / `self.reduce`.
        raise NotImplementedError

    def __call__(self, *args, **kwargs):
        return self.forward(*args, **kwargs)

    # Reduction building block for subclasses (the Pallas hot path).
    @staticmethod
    def reduce(x: jax.Array) -> jax.Array:
        return _pallas_mean(x)


if __name__ == "__main__":
    key = jax.random.PRNGKey(0)
    x = jax.random.normal(key, (2, 4, 16, 16), dtype=jnp.float32)  # NCHW

    loss_mod = BasicLoss()

    # Exercise the Pallas reduction kernel (the only concrete compute).
    result = jax.block_until_ready(loss_mod.reduce(x))
    ref = jnp.mean(x)
    assert jnp.allclose(result, ref, atol=1e-5, rtol=1e-5), (result, ref)

    # bf16 input, n % 1024 != 0 (wrapper tail), ragged blocks + 2-way split.
    y = jax.random.normal(jax.random.PRNGKey(1), (3, 5, 37, 43), dtype=jnp.bfloat16)
    ref2 = jnp.mean(y.astype(jnp.float32))
    r2 = jax.block_until_ready(_pallas_mean(y, block_rows=48, splits=2))
    assert jnp.allclose(r2, ref2, atol=1e-4, rtol=1e-3), (r2, ref2)

    # Same input through the auto (generation-aware) tile/split configuration.
    r3 = jax.block_until_ready(_pallas_mean(y))
    assert jnp.allclose(r3, ref2, atol=1e-4, rtol=1e-3), (r3, ref2)

    # Tiny input (< 1024 elements): wrapper-only scalar path.
    z = jax.random.normal(jax.random.PRNGKey(2), (7, 13), dtype=jnp.float32)
    r4 = jax.block_until_ready(_pallas_mean(z))
    assert jnp.allclose(r4, jnp.mean(z), atol=1e-5, rtol=1e-5), (r4, jnp.mean(z))

    # Reproduce the abstract-forward semantics exactly.
    try:
        loss_mod(x)
        raise AssertionError("forward should raise NotImplementedError")
    except NotImplementedError:
        pass

    print("KERNEL_OK")
</pallas_src>

<mosaic_0001>
module attributes {stable_mosaic.version = 11 : i64} {
  func.func @_sum_kernel(%arg0: i32, %arg1: i32, %arg2: memref<16x128xf32, #tpu.memory_space<vmem>>, %arg3: memref<1x8x128xf32, #tpu.memory_space<vmem>>) attributes {dimension_semantics = [#tpu.dimension_semantics<parallel>, #tpu.dimension_semantics<arbitrary>], iteration_bounds = array<i64: 1, 1>, scalar_prefetch = 0 : i64, scratch_operands = 0 : i64, tpu.core_type = #tpu.core_type<tc>, window_params = [{transform_indices = @transform_0, window_bounds = array<i64: 16, 128>}, {transform_indices = @transform_1, window_bounds = array<i64: 1, 8, 128>}]} {
    %c0_i32 = arith.constant 0 : i32
    %0 = arith.cmpi eq, %arg1, %c0_i32 : i32
    %1 = arith.extui %0 : i1 to i32
    %c0_i32_0 = arith.constant 0 : i32
    %2 = arith.cmpi ne, %1, %c0_i32_0 : i32
    scf.if %2 {
      %cst_8 = arith.constant 0.000000e+00 : f32
      %12 = vector.broadcast %cst_8 : f32 to vector<8x128xf32>
      %c0_9 = arith.constant 0 : index
      %c0_10 = arith.constant 0 : index
      %c0_11 = arith.constant 0 : index
      %13 = vector.load %arg3[%c0_9, %c0_10, %c0_11] : memref<1x8x128xf32, #tpu.memory_space<vmem>>, vector<1x8x128xf32>
      %14 = vector.shape_cast %13 : vector<1x8x128xf32> to vector<8x128xf32>
      %15 = vector.shape_cast %12 : vector<8x128xf32> to vector<1x8x128xf32>
      tpu.vector_store %arg3[%c0_9, %c0_10, %c0_11], %15 {strides = array<i32>} : memref<1x8x128xf32, #tpu.memory_space<vmem>>, vector<1x8x128xf32>,
    } else {
    }
    %c0 = arith.constant 0 : index
    %c0_1 = arith.constant 0 : index
    %3 = vector.load %arg2[%c0, %c0_1] : memref<16x128xf32, #tpu.memory_space<vmem>>, vector<16x128xf32>
    %c0_2 = arith.constant 0 : index
    %c0_3 = arith.constant 0 : index
    %c0_4 = arith.constant 0 : index
    %4 = vector.load %arg3[%c0_2, %c0_3, %c0_4] : memref<1x8x128xf32, #tpu.memory_space<vmem>>, vector<1x8x128xf32>
    %5 = vector.shape_cast %4 : vector<1x8x128xf32> to vector<8x128xf32>
    %6 = vector.shape_cast %3 : vector<16x128xf32> to vector<2x8x128xf32>
    %cst = arith.constant dense<0.000000e+00> : vector<8x128xf32>
    %7 = vector.multi_reduction <add>, %6, %cst [0] : vector<2x8x128xf32> to vector<8x128xf32>
    %8 = arith.addf %5, %7 : vector<8x128xf32>
    %c0_5 = arith.constant 0 : index
    %c0_6 = arith.constant 0 : index
    %c0_7 = arith.constant 0 : index
    %9 = vector.load %arg3[%c0_5, %c0_6, %c0_7] : memref<1x8x128xf32, #tpu.memory_space<vmem>>, vector<1x8x128xf32>
    %10 = vector.shape_cast %9 : vector<1x8x128xf32> to vector<8x128xf32>
    %11 = vector.shape_cast %8 : vector<8x128xf32> to vector<1x8x128xf32>
    tpu.vector_store %arg3[%c0_5, %c0_6, %c0_7], %11 {strides = array<i32>} : memref<1x8x128xf32, #tpu.memory_space<vmem>>, vector<1x8x128xf32>,
    return
  }
  func.func @transform_0(%arg0: i32, %arg1: i32) -> (i32, i32) {
    %c1_i32 = arith.constant 1 : i32
    %0 = arith.muli %arg0, %c1_i32 : i32
    %1 = arith.addi %0, %arg1 : i32
    %c0_i32 = arith.constant 0 : i32
    %c0_i32_0 = arith.constant 0 : i32
    return %1, %c0_i32 : i32, i32
  }
  func.func @transform_1(%arg0: i32, %arg1: i32) -> (i32, i32, i32) {
    %c0_i32 = arith.constant 0 : i32
    %c0_i32_0 = arith.constant 0 : i32
    %c0_i32_1 = arith.constant 0 : i32
    return %arg0, %c0_i32, %c0_i32_0 : i32, i32, i32
  }
}

</mosaic_0001>

<bundles_post_ra>
// kernel: pallas_mean.1
= control target key start
LH: loop header
LB: loop body
LE: loop exit
PB: predicated region body
PF: predicated region fallthrough
CT: control target
= control target key end

     0   :  { %s71_s0 = inlined_call_operand.vmem [shape: f32[16,128], index: 0, kind: input, shape index: {}]   ;;  %s72_s1 = inlined_call_operand.vmem [shape: f32[1,8,128], index: 1, kind: output, shape index: {}]  }
   0x1   :  { %v35_v0 = vld [vmem:[%s71_s0] sm:$0xff]  ;;  %v36_v1 = vld [vmem:[%s71_s0 + $0x8] sm:$0xff] }
   0x2   :  { %v38_v2 = vadd.f32 %v36_v1, %v35_v0 }
   0x4   :  { %40 = vst [vmem:[%s72_s1] sm:$0xff] %v38_v2 }

</bundles_post_ra>
